<compile_context>
chip_gen: v7x
topology: tpu7x:2x2x1
jax: 0.10.0
libtpu: 0.0.40
codegen_flags: <defaults>
</compile_context>

<pallas_src>
import functools

import jax
import jax.numpy as jnp
from jax.experimental import pallas as pl
from jax.experimental.pallas import tpu as pltpu

EPS = 1e-12  # torch.nn.functional.normalize default eps


def _round_up(v, m):
    return (v + m - 1) // m * m


# ------------------------------ Pallas kernel -------------------------------

def _normed_linear_kernel(x_ref, wn_ref, o_ref):
    # x_ref: (TM, K) native dtype; wn_ref: (K, N) f32, already column-normalized
    # and VMEM-resident across the M grid.
    x = x_ref[...].astype(jnp.float32)
    # F.normalize semantics: v / max(||v||_2, eps).
    # rsqrt(max(sumsq, eps^2)) == 1 / max(sqrt(sumsq), eps)  (sqrt monotone).
    x_inv = jax.lax.rsqrt(
        jnp.maximum(jnp.sum(x * x, axis=1, keepdims=True), EPS * EPS))
    xn = x * x_inv
    o_ref[...] = jnp.dot(xn, wn_ref[...],
                         preferred_element_type=jnp.float32).astype(o_ref.dtype)


# --------------------------------- wrapper ----------------------------------

@functools.partial(jax.jit, static_argnames=("block_m",))
def normed_linear(x, weight, *, block_m=2048):
    """out = normalize(x, dim=1) @ normalize(weight, dim=0)."""
    m, k = x.shape
    kw, n = weight.shape
    assert k == kw, "in_features mismatch"

    # Column-normalize the (tiny) weight once in the wrapper; K x N is a few
    # KB so this costs nothing and removes per-tile XLU/VPU work in the kernel.
    w32 = weight.astype(jnp.float32)
    wn = w32 * jax.lax.rsqrt(
        jnp.maximum(jnp.sum(w32 * w32, axis=0, keepdims=True), EPS * EPS))

    # Tile the M axis only.  Sublane multiple: 16 for bf16 packing, else 8.
    sub = 16 if x.dtype == jnp.bfloat16 else 8
    # Cap the tile at ceil(m/2) so the parallel grid has >=2 steps for large m
    # (keeps both v7x TensorCores busy); tiny m collapses to a single tile.
    tm = min(block_m, max(_round_up(pl.cdiv(m, 2), sub), sub))
    grid_m = pl.cdiv(m, tm)

    out_dtype = jnp.result_type(x.dtype, weight.dtype)

    return pl.pallas_call(
        _normed_linear_kernel,
        out_shape=jax.ShapeDtypeStruct((m, n), out_dtype),
        grid_spec=pltpu.PrefetchScalarGridSpec(
            num_scalar_prefetch=0,
            grid=(grid_m,),
            in_specs=[
                # x tiles over M; K block == full K (no padding needed).
                pl.BlockSpec((tm, k), lambda i: (i, 0)),
                # weight resident in VMEM across the whole grid.
                pl.BlockSpec((k, n), lambda i: (0, 0)),
            ],
            # Exact-size output; tail tile writes are masked by Pallas.
            out_specs=pl.BlockSpec((tm, n), lambda i: (i, 0)),
        ),
        compiler_params=pltpu.CompilerParams(
            dimension_semantics=("parallel",),  # shard M over TCs (v7x)
        ),
    )(x, wn)


# ----------------------------------- main ------------------------------------

if __name__ == "__main__":
    # Small shapes consistent with the module (in_features -> out_features).
    BATCH, IN_FEATURES, OUT_FEATURES = 8, 32, 16

    key = jax.random.PRNGKey(0)
    kx, kw = jax.random.split(key)

    x = jax.random.normal(kx, (BATCH, IN_FEATURES), dtype=jnp.float32)

    # Mimic the Parameter init: uniform(-1,1).renorm_(2, 1, 1e-5).mul_(1e5)
    # (init-time only; forward re-normalizes columns anyway).
    w = jax.random.uniform(kw, (IN_FEATURES, OUT_FEATURES), jnp.float32,
                           minval=-1.0, maxval=1.0)
    col_norm = jnp.linalg.norm(w, axis=0, keepdims=True)
    w = w * jnp.where(col_norm > 1e-5, 1e-5 / (col_norm + 1e-7), 1.0) * 1e5

    out = normed_linear(x, w)
    jax.block_until_ready(out)

    # Pure-JAX reference (F.normalize semantics) for a correctness gate.
    xn = x / jnp.maximum(jnp.linalg.norm(x, axis=1, keepdims=True), EPS)
    wn = w / jnp.maximum(jnp.linalg.norm(w, axis=0, keepdims=True), EPS)
    ref = xn @ wn

    assert out.shape == (BATCH, OUT_FEATURES)
    assert jnp.allclose(out, ref, atol=1e-5, rtol=1e-5), "mismatch vs reference"
    print("KERNEL_OK")
</pallas_src>

<mosaic_0001>
module attributes {stable_mosaic.version = 11 : i64} {
  func.func @_normed_linear_kernel(%arg0: i32, %arg1: memref<8x32xf32, #tpu.memory_space<vmem>>, %arg2: memref<32x16xf32, #tpu.memory_space<vmem>>, %arg3: memref<8x16xf32, #tpu.memory_space<vmem>>) attributes {dimension_semantics = [#tpu.dimension_semantics<parallel>], iteration_bounds = array<i64: 1>, scalar_prefetch = 0 : i64, scratch_operands = 0 : i64, tpu.core_type = #tpu.core_type<tc>, window_params = [{transform_indices = @transform_0, window_bounds = array<i64: 8, 32>}, {pipeline_mode = #tpu.pipeline_mode<synchronous>, transform_indices = @transform_1, window_bounds = array<i64: 32, 16>}, {transform_indices = @transform_2, window_bounds = array<i64: 8, 16>}]} {
    %c0 = arith.constant 0 : index
    %c0_0 = arith.constant 0 : index
    %0 = vector.load %arg1[%c0, %c0_0] : memref<8x32xf32, #tpu.memory_space<vmem>>, vector<8x32xf32>
    %1 = arith.mulf %0, %0 : vector<8x32xf32>
    %cst = arith.constant dense<0.000000e+00> : vector<8xf32>
    %2 = vector.multi_reduction <add>, %1, %cst [1] : vector<8x32xf32> to vector<8xf32>
    %3 = vector.shape_cast %2 : vector<8xf32> to vector<8x1xf32>
    %cst_1 = arith.constant 1.000000e-24 : f32
    %4 = vector.broadcast %cst_1 : f32 to vector<8x1xf32>
    %5 = arith.maximumf %3, %4 : vector<8x1xf32>
    %6 = math.rsqrt %5 : vector<8x1xf32>
    %7 = vector.broadcast %6 : vector<8x1xf32> to vector<8x32xf32>
    %8 = arith.mulf %0, %7 : vector<8x32xf32>
    %c0_2 = arith.constant 0 : index
    %c0_3 = arith.constant 0 : index
    %9 = vector.load %arg2[%c0_2, %c0_3] : memref<32x16xf32, #tpu.memory_space<vmem>>, vector<32x16xf32>
    %cst_4 = arith.constant dense<0.000000e+00> : vector<8x16xf32>
    %10 = tpu.matmul %8, %9, %cst_4 {dimension_numbers = #tpu.dot_dimension_numbers<[1], [0], [0], [1], [0, 0, 1, 1], [], []>} : vector<8x32xf32>, vector<32x16xf32>, vector<8x16xf32> -> vector<8x16xf32>
    %c0_5 = arith.constant 0 : index
    %c0_6 = arith.constant 0 : index
    %11 = vector.load %arg3[%c0_5, %c0_6] : memref<8x16xf32, #tpu.memory_space<vmem>>, vector<8x16xf32>
    tpu.vector_store %arg3[%c0_5, %c0_6], %10 {strides = array<i32>} : memref<8x16xf32, #tpu.memory_space<vmem>>, vector<8x16xf32>,
    return
  }
  func.func @transform_0(%arg0: i32) -> (i32, i32) {
    %c0_i32 = arith.constant 0 : i32
    %c0_i32_0 = arith.constant 0 : i32
    return %arg0, %c0_i32 : i32, i32
  }
  func.func @transform_1(%arg0: i32) -> (i32, i32) {
    %c0_i32 = arith.constant 0 : i32
    %c0_i32_0 = arith.constant 0 : i32
    %c0_i32_1 = arith.constant 0 : i32
    return %c0_i32, %c0_i32_0 : i32, i32
  }
  func.func @transform_2(%arg0: i32) -> (i32, i32) {
    %c0_i32 = arith.constant 0 : i32
    %c0_i32_0 = arith.constant 0 : i32
    return %arg0, %c0_i32 : i32, i32
  }
}

</mosaic_0001>

<bundles_post_ra>
// kernel: normed_linear.1
= control target key start
LH: loop header
LB: loop body
LE: loop exit
PB: predicated region body
PF: predicated region fallthrough
CT: control target
= control target key end

     0   :  { %vm14_vm0 = vcmask 261120   ;;  %s215_s0 = inlined_call_operand.vmem [shape: f32[8,32], index: 0, kind: input, shape index: {}]   ;;  %s216_s1 = inlined_call_operand.vmem [shape: f32[32,16], index: 1, kind: input, shape index: {}]   ;;  %s217_s2 = inlined_call_operand.hbm [shape: f32[8,16], index: 2, kind: output, shape index: {}]  }
   0x1   :  { %v12_v0 = vld [vmem:[%s215_s0] sm:$0xff] }
   0x2   :  { %7 = vsyncpa [#allocation3], 0  ;;  %v13_v1 = vmul.f32 %v12_v0, %v12_v0  ;;  %v21_v3 = vld [vmem:[%s216_s1] sm:$0xff]  ;;  %v22_v4 = vld [vmem:[%s216_s1 + $0x8] sm:$0xff]  ;;  %v167_v6 = vmov 0.0|0.0   ;;  %vm168_vm1 = vmmov 0  }
   0x3   :  { %v23_v5 = vld [vmem:[%s216_s1 + $0x10] sm:$0xff]  ;;  %131 = vmatprep.subr.bf16.mxu0 %v167_v6  ;;  %v132_v7 = vpack.c.bf16 %v22_v4, %v21_v3  ;;  %v24_v8 = vld [vmem:[%s216_s1 + $0x18] sm:$0xff]  ;;  %v169_v9 = vmov 0.0   ;;  %s170_s18 = smov [#allocation2]   ;;  %vm98_vm2 = vcmask 130048  }
   0x4   :  { %v15_v2 = vsel %vm14_vm0, %v13_v1, 0.0  ;;  %128 = vmatprep.mubr.msk.f32.mxu0 %vm168_vm1, %v169_v9  ;;  %v135_v10 = vpack.c.bf16 %v24_v8, %v23_v5  ;;  %s106_s19 = sshll.u32 %s170_s18, 4  ;;  %s107_s19 = int_to_ptr.vmem [resolvable:$true] %s106_s19 }
   0x5   :  { %16 = vadd.xlane.f32.xlu0 %v15_v2  ;;  %133 = vmatpush3.bf16.msra.mxu0 %v132_v7  ;;  %s143_s1 = scalar_lea.vmem %s107_s19, 128  ;;  %p148_p1 = scmp.lt.s32.totalorder %s107_s19, %s107_s19 }
   0x6   :  { %134 = vmatprep.subr.bf16.mxu0 %v167_v6  ;;  %p144_p0 = scmp.ne.s32.totalorder %s107_s19, %s143_s1  ;;  %p149_p2 = scmp.lt.s32.totalorder %s143_s1, %s143_s1 }
   0x8   :  { %p150_p3 = por %p149_p2, %p148_p1 }
   0x9   :  { %136 = vmatpush3.bf16.msra.mxu0 %v135_v10 }
   0xa   :  { %p151_p4 = pnand %p150_p3, %p144_p0 }
  0x92   :  { %v17_v11 = vpop.xlane.xlu0 %16 }
  0x93   :  { %v18_v12 = vmax.f32 %v17_v11, 1e-24 }
  0x95   :  { %141 = vrsqrt.f32 %v18_v12 }
  0x9f   :  { %v142_v13 = vpop.eup %141 }
  0xa0   :  { %v20_v14 = vmul.f32 %v142_v13, %v12_v0 }
  0xa2   :  { %129 = vmatmul.mubr.msk.f32.vlgmr.msra.gmra.mrb[0].mxu0 %vm14_vm0, %v20_v14 }
 0x175   :  { %v94_v15 = vpop.f32.mrb[0].mxu0 }
 0x176   :  { %99 = vst.msk [vmem:[#allocation2] sm:$0xff] %vm98_vm2, %v94_v15  ;;  %v130_v16 = vpop.f32.mrb[1].mxu0 }
 0x177   :  { %154 = shalt.err (!%p151_p4)
}
 0x178   :  { %s155_s22 = scalar_lea.hbm %s217_s2, 128 }
 0x179   :  { %p156_p5 = scmp.ne.s32.totalorder %s217_s2, %s155_s22  ;;  %p159_p6 = scmp.lt.u32.totalorder %s155_s22, %s217_s2 }
 0x17b   :  { %p161_p7 = pnand %p159_p6, %p156_p5 }
 0x17d   :  { %164 = shalt.err (!%p161_p7)
}
 0x17e   :  { %109 = dma.vmem_to_hbm [thread:$0]  %s107_s19, 128, %s217_s2, [#allocation3]  }
 0x17f   :  { %165 = dma.done.wait [#allocation3], 128  }
 0x180   :  { %166 = vsyncadd [#allocation3], 4294967168 }
 0x181   :  { %113 = vsyncpa [#allocation3], 1 }

</bundles_post_ra>
